<compile_context>
chip_gen: v5e
topology: v5e:2x2
jax: 0.10.0
libtpu: 0.0.40
codegen_flags: <defaults>
</compile_context>

<pallas_src>
import functools

import jax
import jax.numpy as jnp
import numpy as np
from jax.experimental import pallas as pl
from jax.experimental.pallas import tpu as pltpu

PI = 3.1415927410125732  # exact constant used in the PyTorch module
LEAKY_SLOPE = 0.2        # nn.LeakyReLU(0.2)


def _mlp_kernel(x_ref, freq_ref, phase_ref, ident_ref, *refs,
                n_banks: int, scale: float, n_layers: int):
    """Fused PositionalMapping + Linear stack for one (TILE_B, D) row block.

    refs = (w1, b1, w2, b2, ..., wN, bN, o_ref); weights are (in, out)."""
    o_ref = refs[-1]
    wb = refs[:-1]

    x = x_ref[...].astype(jnp.float32)
    if scale != 1.0:
        x = x * scale

    # ---- Positional mapping, vectorized across the full mapped width ------
    # Layout of the mapped axis: [x, sin(2^0*pi*x), cos(2^0*pi*x), ...,
    # sin(2^(L-1)*pi*x), cos(2^(L-1)*pi*x)], each bank of width D.
    x_rep = jnp.tile(x, (1, n_banks))                      # (TILE_B, D*(2L+1))
    trig = jnp.sin(x_rep * freq_ref[...] + phase_ref[...])  # one EUP pass
    ident = ident_ref[...]                                   # 1.0 on identity lanes
    h = ident * x_rep + (1.0 - ident) * trig
    if scale != 1.0:
        h = h / scale

    # ---- Linear stack: LeakyReLU(0.2) on all but the last layer ------------
    for k in range(n_layers):
        w = wb[2 * k][...]
        b = wb[2 * k + 1][...]
        h = jnp.dot(h, w, preferred_element_type=jnp.float32,
                    precision=jax.lax.Precision.HIGHEST) + b
        if k < n_layers - 1:
            h = jnp.maximum(h, LEAKY_SLOPE * h)   # == LeakyReLU(0.2)

    o_ref[...] = h.astype(o_ref.dtype)


def mlp_forward(x, weights, biases, *, L: int = 7, scale: float = 1.0,
                tile_b: int = 256):
    """Pallas forward pass of the MLP module.

    x: any shape (flattened to (1, -1), matching x.view([1, -1])).
    weights[k]: (in_k, out_k) f32, biases[k]: (out_k,) f32.
    """
    assert len(weights) == len(biases) and len(weights) >= 1
    n_layers = len(weights)
    x2 = jnp.reshape(x, (1, -1))               # x.view([1, -1])
    B, D = x2.shape
    n_banks = 2 * L + 1
    mapped_dim = D * n_banks
    assert weights[0].shape[0] == mapped_dim, (weights[0].shape, mapped_dim)
    out_dim = weights[-1].shape[1]

    if L == 0:
        # PositionalMapping degenerates to x*scale; tiny, let XLA handle it.
        # TODO(synk): not exercised by the reference MLP (which uses L=7).
        h = x2 * scale
        for k in range(n_layers - 1):
            h = h @ weights[k] + biases[k]
            h = jnp.maximum(h, LEAKY_SLOPE * h)
        return h @ weights[-1] + biases[-1]

    # Per-lane constants for the vectorized positional mapping.
    freq_np = np.zeros((1, mapped_dim), np.float32)
    phase_np = np.zeros((1, mapped_dim), np.float32)
    ident_np = np.zeros((1, mapped_dim), np.float32)
    ident_np[:, :D] = 1.0
    for i in range(L):
        f = np.float32((2.0 ** i) * PI)
        s0 = D * (1 + 2 * i)
        freq_np[:, s0:s0 + D] = f                      # sin bank
        freq_np[:, s0 + D:s0 + 2 * D] = f              # cos bank
        phase_np[:, s0 + D:s0 + 2 * D] = np.float32(PI / 2)  # cos(a)=sin(a+pi/2)
    freq = jnp.asarray(freq_np)
    phase = jnp.asarray(phase_np)
    ident = jnp.asarray(ident_np)

    # Batch tiling: pad rows to a sublane-friendly tile, 1-D parallel grid.
    tile_b = max(8, min(tile_b, ((B + 7) // 8) * 8))
    B_pad = ((B + tile_b - 1) // tile_b) * tile_b
    if B_pad != B:
        x2 = jnp.pad(x2, ((0, B_pad - B), (0, 0)))
    grid = (B_pad // tile_b,)

    def const_spec(arr):
        # Full-array block, same block for every grid step -> stays resident.
        return pl.BlockSpec(arr.shape, lambda i: (0, 0))

    in_specs = [pl.BlockSpec((tile_b, D), lambda i: (i, 0)),
                const_spec(freq), const_spec(phase), const_spec(ident)]
    wb_args = []
    for w, b in zip(weights, biases):
        b2 = jnp.reshape(b, (1, -1))
        in_specs += [const_spec(w), const_spec(b2)]
        wb_args += [w, b2]

    kernel = functools.partial(_mlp_kernel, n_banks=n_banks,
                               scale=float(scale), n_layers=n_layers)

    out = pl.pallas_call(
        kernel,
        out_shape=jax.ShapeDtypeStruct((B_pad, out_dim), x2.dtype),
        grid=grid,
        in_specs=in_specs,
        out_specs=pl.BlockSpec((tile_b, out_dim), lambda i: (i, 0)),
        compiler_params=pltpu.CompilerParams(
            dimension_semantics=("parallel",)),
    )(x2, freq, phase, ident, *wb_args)
    return out[:B]


def _reference_forward(x, weights, biases, *, L=7, scale=1.0):
    """Pure-JAX mirror of the PyTorch MLP.forward for verification."""
    x = jnp.reshape(x, (1, -1))
    xs = x * scale
    if L == 0:
        m = xs
    else:
        h = [xs]
        for i in range(L):
            h.append(jnp.sin((2.0 ** i) * PI * xs))
            h.append(jnp.cos((2.0 ** i) * PI * xs))
        m = jnp.concatenate(h, axis=-1) / scale
    a = m
    for k in range(len(weights) - 1):
        a = jnp.dot(a, weights[k],
                    precision=jax.lax.Precision.HIGHEST) + biases[k].reshape(1, -1)
        a = jnp.where(a >= 0, a, LEAKY_SLOPE * a)
    return jnp.dot(a, weights[-1],
                   precision=jax.lax.Precision.HIGHEST) + biases[-1].reshape(1, -1)


if __name__ == "__main__":
    key = jax.random.PRNGKey(0)
    input_dim, output_dim, hidden_layers, hidden_size, L = 4, 2, 2, 32, 7
    mapped_dim = input_dim * (2 * L + 1)   # 60

    # Layer dims: mapped -> hidden -> hidden -> hidden -> out  (4 Linear layers)
    dims = [mapped_dim] + [hidden_size] * (hidden_layers + 1) + [output_dim]
    n_layers = len(dims) - 1
    keys = jax.random.split(key, 1 + 2 * n_layers)

    x = jax.random.normal(keys[0], (input_dim,), dtype=jnp.float32)
    weights, biases = [], []
    for li in range(n_layers):
        w = jax.random.normal(keys[1 + 2 * li], (dims[li], dims[li + 1]),
                              dtype=jnp.float32) / np.sqrt(dims[li])
        b = jax.random.normal(keys[2 + 2 * li], (dims[li + 1],),
                              dtype=jnp.float32) * 0.01
        weights.append(w)
        biases.append(b)

    out = mlp_forward(x, weights, biases, L=L, scale=1.0)
    out = jax.block_until_ready(out)

    ref = _reference_forward(x, weights, biases, L=L, scale=1.0)
    assert out.shape == (1, output_dim), out.shape
    assert jnp.allclose(out, ref, atol=1e-3, rtol=1e-3), (out, ref)

    print("KERNEL_OK")
</pallas_src>

<mosaic_0001>
module attributes {stable_mosaic.version = 11 : i64} {
  func.func @_mlp_kernel(%arg0: i32, %arg1: memref<8x4xf32, #tpu.memory_space<vmem>>, %arg2: memref<1x60xf32, #tpu.memory_space<vmem>>, %arg3: memref<1x60xf32, #tpu.memory_space<vmem>>, %arg4: memref<1x60xf32, #tpu.memory_space<vmem>>, %arg5: memref<60x32xf32, #tpu.memory_space<vmem>>, %arg6: memref<1x32xf32, #tpu.memory_space<vmem>>, %arg7: memref<32x32xf32, #tpu.memory_space<vmem>>, %arg8: memref<1x32xf32, #tpu.memory_space<vmem>>, %arg9: memref<32x32xf32, #tpu.memory_space<vmem>>, %arg10: memref<1x32xf32, #tpu.memory_space<vmem>>, %arg11: memref<32x2xf32, #tpu.memory_space<vmem>>, %arg12: memref<1x2xf32, #tpu.memory_space<vmem>>, %arg13: memref<8x2xf32, #tpu.memory_space<vmem>>) attributes {dimension_semantics = [#tpu.dimension_semantics<parallel>], iteration_bounds = array<i64: 1>, scalar_prefetch = 0 : i64, scratch_operands = 0 : i64, tpu.core_type = #tpu.core_type<tc>, window_params = [{transform_indices = @transform_0, window_bounds = array<i64: 8, 4>}, {pipeline_mode = #tpu.pipeline_mode<synchronous>, transform_indices = @transform_1, window_bounds = array<i64: 1, 60>}, {pipeline_mode = #tpu.pipeline_mode<synchronous>, transform_indices = @transform_2, window_bounds = array<i64: 1, 60>}, {pipeline_mode = #tpu.pipeline_mode<synchronous>, transform_indices = @transform_3, window_bounds = array<i64: 1, 60>}, {pipeline_mode = #tpu.pipeline_mode<synchronous>, transform_indices = @transform_4, window_bounds = array<i64: 60, 32>}, {pipeline_mode = #tpu.pipeline_mode<synchronous>, transform_indices = @transform_5, window_bounds = array<i64: 1, 32>}, {pipeline_mode = #tpu.pipeline_mode<synchronous>, transform_indices = @transform_6, window_bounds = array<i64: 32, 32>}, {pipeline_mode = #tpu.pipeline_mode<synchronous>, transform_indices = @transform_7, window_bounds = array<i64: 1, 32>}, {pipeline_mode = #tpu.pipeline_mode<synchronous>, transform_indices = @transform_8, window_bounds = array<i64: 32, 32>}, {pipeline_mode = #tpu.pipeline_mode<synchronous>, transform_indices = @transform_9, window_bounds = array<i64: 1, 32>}, {pipeline_mode = #tpu.pipeline_mode<synchronous>, transform_indices = @transform_10, window_bounds = array<i64: 32, 2>}, {pipeline_mode = #tpu.pipeline_mode<synchronous>, transform_indices = @transform_11, window_bounds = array<i64: 1, 2>}, {transform_indices = @transform_12, window_bounds = array<i64: 8, 2>}]} {
    %c0 = arith.constant 0 : index
    %c0_0 = arith.constant 0 : index
    %0 = vector.load %arg1[%c0, %c0_0] : memref<8x4xf32, #tpu.memory_space<vmem>>, vector<8x4xf32>
    %1 = tpu.concatenate %0, %0, %0, %0, %0, %0, %0, %0, %0, %0, %0, %0, %0, %0, %0 in 1 : vector<8x4xf32>, vector<8x4xf32>, vector<8x4xf32>, vector<8x4xf32>, vector<8x4xf32>, vector<8x4xf32>, vector<8x4xf32>, vector<8x4xf32>, vector<8x4xf32>, vector<8x4xf32>, vector<8x4xf32>, vector<8x4xf32>, vector<8x4xf32>, vector<8x4xf32>, vector<8x4xf32> -> vector<8x60xf32>
    %c0_1 = arith.constant 0 : index
    %c0_2 = arith.constant 0 : index
    %2 = vector.load %arg2[%c0_1, %c0_2] : memref<1x60xf32, #tpu.memory_space<vmem>>, vector<1x60xf32>
    %3 = vector.broadcast %2 : vector<1x60xf32> to vector<8x60xf32>
    %4 = arith.mulf %1, %3 : vector<8x60xf32>
    %c0_3 = arith.constant 0 : index
    %c0_4 = arith.constant 0 : index
    %5 = vector.load %arg3[%c0_3, %c0_4] : memref<1x60xf32, #tpu.memory_space<vmem>>, vector<1x60xf32>
    %6 = vector.broadcast %5 : vector<1x60xf32> to vector<8x60xf32>
    %7 = arith.addf %4, %6 : vector<8x60xf32>
    %8 = math.sin %7 : vector<8x60xf32>
    %c0_5 = arith.constant 0 : index
    %c0_6 = arith.constant 0 : index
    %9 = vector.load %arg4[%c0_5, %c0_6] : memref<1x60xf32, #tpu.memory_space<vmem>>, vector<1x60xf32>
    %10 = vector.broadcast %9 : vector<1x60xf32> to vector<8x60xf32>
    %11 = arith.mulf %10, %1 : vector<8x60xf32>
    %cst = arith.constant 1.000000e+00 : f32
    %12 = vector.broadcast %cst : f32 to vector<1x60xf32>
    %13 = arith.subf %12, %9 : vector<1x60xf32>
    %14 = vector.broadcast %13 : vector<1x60xf32> to vector<8x60xf32>
    %15 = arith.mulf %14, %8 : vector<8x60xf32>
    %16 = arith.addf %11, %15 : vector<8x60xf32>
    %c0_7 = arith.constant 0 : index
    %c0_8 = arith.constant 0 : index
    %17 = vector.load %arg5[%c0_7, %c0_8] : memref<60x32xf32, #tpu.memory_space<vmem>>, vector<60x32xf32>
    %c0_9 = arith.constant 0 : index
    %c0_10 = arith.constant 0 : index
    %18 = vector.load %arg6[%c0_9, %c0_10] : memref<1x32xf32, #tpu.memory_space<vmem>>, vector<1x32xf32>
    %cst_11 = arith.constant dense<0.000000e+00> : vector<8x32xf32>
    %19 = tpu.matmul %16, %17, %cst_11 {dimension_numbers = #tpu.dot_dimension_numbers<[1], [0], [0], [1], [0, 0, 1, 1], [], []>, precision = #tpu.contract_precision<fp32>} : vector<8x60xf32>, vector<60x32xf32>, vector<8x32xf32> -> vector<8x32xf32>
    %20 = vector.broadcast %18 : vector<1x32xf32> to vector<8x32xf32>
    %21 = arith.addf %19, %20 : vector<8x32xf32>
    %cst_12 = arith.constant 2.000000e-01 : f32
    %22 = vector.broadcast %cst_12 : f32 to vector<8x32xf32>
    %23 = arith.mulf %22, %21 : vector<8x32xf32>
    %24 = arith.maximumf %21, %23 : vector<8x32xf32>
    %c0_13 = arith.constant 0 : index
    %c0_14 = arith.constant 0 : index
    %25 = vector.load %arg7[%c0_13, %c0_14] : memref<32x32xf32, #tpu.memory_space<vmem>>, vector<32x32xf32>
    %c0_15 = arith.constant 0 : index
    %c0_16 = arith.constant 0 : index
    %26 = vector.load %arg8[%c0_15, %c0_16] : memref<1x32xf32, #tpu.memory_space<vmem>>, vector<1x32xf32>
    %cst_17 = arith.constant dense<0.000000e+00> : vector<8x32xf32>
    %27 = tpu.matmul %24, %25, %cst_17 {dimension_numbers = #tpu.dot_dimension_numbers<[1], [0], [0], [1], [0, 0, 1, 1], [], []>, precision = #tpu.contract_precision<fp32>} : vector<8x32xf32>, vector<32x32xf32>, vector<8x32xf32> -> vector<8x32xf32>
    %28 = vector.broadcast %26 : vector<1x32xf32> to vector<8x32xf32>
    %29 = arith.addf %27, %28 : vector<8x32xf32>
    %cst_18 = arith.constant 2.000000e-01 : f32
    %30 = vector.broadcast %cst_18 : f32 to vector<8x32xf32>
    %31 = arith.mulf %30, %29 : vector<8x32xf32>
    %32 = arith.maximumf %29, %31 : vector<8x32xf32>
    %c0_19 = arith.constant 0 : index
    %c0_20 = arith.constant 0 : index
    %33 = vector.load %arg9[%c0_19, %c0_20] : memref<32x32xf32, #tpu.memory_space<vmem>>, vector<32x32xf32>
    %c0_21 = arith.constant 0 : index
    %c0_22 = arith.constant 0 : index
    %34 = vector.load %arg10[%c0_21, %c0_22] : memref<1x32xf32, #tpu.memory_space<vmem>>, vector<1x32xf32>
    %cst_23 = arith.constant dense<0.000000e+00> : vector<8x32xf32>
    %35 = tpu.matmul %32, %33, %cst_23 {dimension_numbers = #tpu.dot_dimension_numbers<[1], [0], [0], [1], [0, 0, 1, 1], [], []>, precision = #tpu.contract_precision<fp32>} : vector<8x32xf32>, vector<32x32xf32>, vector<8x32xf32> -> vector<8x32xf32>
    %36 = vector.broadcast %34 : vector<1x32xf32> to vector<8x32xf32>
    %37 = arith.addf %35, %36 : vector<8x32xf32>
    %cst_24 = arith.constant 2.000000e-01 : f32
    %38 = vector.broadcast %cst_24 : f32 to vector<8x32xf32>
    %39 = arith.mulf %38, %37 : vector<8x32xf32>
    %40 = arith.maximumf %37, %39 : vector<8x32xf32>
    %c0_25 = arith.constant 0 : index
    %c0_26 = arith.constant 0 : index
    %41 = vector.load %arg11[%c0_25, %c0_26] : memref<32x2xf32, #tpu.memory_space<vmem>>, vector<32x2xf32>
    %c0_27 = arith.constant 0 : index
    %c0_28 = arith.constant 0 : index
    %42 = vector.load %arg12[%c0_27, %c0_28] : memref<1x2xf32, #tpu.memory_space<vmem>>, vector<1x2xf32>
    %cst_29 = arith.constant dense<0.000000e+00> : vector<8x2xf32>
    %43 = tpu.matmul %40, %41, %cst_29 {dimension_numbers = #tpu.dot_dimension_numbers<[1], [0], [0], [1], [0, 0, 1, 1], [], []>, precision = #tpu.contract_precision<fp32>} : vector<8x32xf32>, vector<32x2xf32>, vector<8x2xf32> -> vector<8x2xf32>
    %44 = vector.broadcast %42 : vector<1x2xf32> to vector<8x2xf32>
    %45 = arith.addf %43, %44 : vector<8x2xf32>
    %c0_30 = arith.constant 0 : index
    %c0_31 = arith.constant 0 : index
    %46 = vector.load %arg13[%c0_30, %c0_31] : memref<8x2xf32, #tpu.memory_space<vmem>>, vector<8x2xf32>
    tpu.vector_store %arg13[%c0_30, %c0_31], %45 {strides = array<i32>} : memref<8x2xf32, #tpu.memory_space<vmem>>, vector<8x2xf32>,
    return
  }
  func.func @transform_0(%arg0: i32) -> (i32, i32) {
    %c0_i32 = arith.constant 0 : i32
    %c0_i32_0 = arith.constant 0 : i32
    return %arg0, %c0_i32 : i32, i32
  }
  func.func @transform_1(%arg0: i32) -> (i32, i32) {
    %c0_i32 = arith.constant 0 : i32
    %c0_i32_0 = arith.constant 0 : i32
    %c0_i32_1 = arith.constant 0 : i32
    return %c0_i32, %c0_i32_0 : i32, i32
  }
  func.func @transform_2(%arg0: i32) -> (i32, i32) {
    %c0_i32 = arith.constant 0 : i32
    %c0_i32_0 = arith.constant 0 : i32
    %c0_i32_1 = arith.constant 0 : i32
    return %c0_i32, %c0_i32_0 : i32, i32
  }
  func.func @transform_3(%arg0: i32) -> (i32, i32) {
    %c0_i32 = arith.constant 0 : i32
    %c0_i32_0 = arith.constant 0 : i32
    %c0_i32_1 = arith.constant 0 : i32
    return %c0_i32, %c0_i32_0 : i32, i32
  }
  func.func @transform_4(%arg0: i32) -> (i32, i32) {
    %c0_i32 = arith.constant 0 : i32
    %c0_i32_0 = arith.constant 0 : i32
    %c0_i32_1 = arith.constant 0 : i32
    return %c0_i32, %c0_i32_0 : i32, i32
  }
  func.func @transform_5(%arg0: i32) -> (i32, i32) {
    %c0_i32 = arith.constant 0 : i32
    %c0_i32_0 = arith.constant 0 : i32
    %c0_i32_1 = arith.constant 0 : i32
    return %c0_i32, %c0_i32_0 : i32, i32
  }
  func.func @transform_6(%arg0: i32) -> (i32, i32) {
    %c0_i32 = arith.constant 0 : i32
    %c0_i32_0 = arith.constant 0 : i32
    %c0_i32_1 = arith.constant 0 : i32
    return %c0_i32, %c0_i32_0 : i32, i32
  }
  func.func @transform_7(%arg0: i32) -> (i32, i32) {
    %c0_i32 = arith.constant 0 : i32
    %c0_i32_0 = arith.constant 0 : i32
    %c0_i32_1 = arith.constant 0 : i32
    return %c0_i32, %c0_i32_0 : i32, i32
  }
  func.func @transform_8(%arg0: i32) -> (i32, i32) {
    %c0_i32 = arith.constant 0 : i32
    %c0_i32_0 = arith.constant 0 : i32
    %c0_i32_1 = arith.constant 0 : i32
    return %c0_i32, %c0_i32_0 : i32, i32
  }
  func.func @transform_9(%arg0: i32) -> (i32, i32) {
    %c0_i32 = arith.constant 0 : i32
    %c0_i32_0 = arith.constant 0 : i32
    %c0_i32_1 = arith.constant 0 : i32
    return %c0_i32, %c0_i32_0 : i32, i32
  }
  func.func @transform_10(%arg0: i32) -> (i32, i32) {
    %c0_i32 = arith.constant 0 : i32
    %c0_i32_0 = arith.constant 0 : i32
    %c0_i32_1 = arith.constant 0 : i32
    return %c0_i32, %c0_i32_0 : i32, i32
  }
  func.func @transform_11(%arg0: i32) -> (i32, i32) {
    %c0_i32 = arith.constant 0 : i32
    %c0_i32_0 = arith.constant 0 : i32
    %c0_i32_1 = arith.constant 0 : i32
    return %c0_i32, %c0_i32_0 : i32, i32
  }
  func.func @transform_12(%arg0: i32) -> (i32, i32) {
    %c0_i32 = arith.constant 0 : i32
    %c0_i32_0 = arith.constant 0 : i32
    return %arg0, %c0_i32 : i32, i32
  }
}

</mosaic_0001>

<bundles_post_ra>
// kernel: tpu_custom_call.1
= control target key start
LH: loop header
LB: loop body
LE: loop exit
PB: predicated region body
PF: predicated region fallthrough
CT: control target
= control target key end

     0   :  { %s1177_s23 = smov 4   ;;  %s1178_s24 = smov 12   ;;  %vm85_vm0 = vcmask 31744   ;;  %vm87_vm1 = vcmask 64512   ;;  %vm89_vm2 = vcmask 97280   ;;  %vm91_vm3 = vcmask 130048   ;;  %s1529_s0 = inlined_call_operand.vmem [shape: f32[8,4], index: 0, kind: input, shape index: {}]   ;;  %s1530_s1 = inlined_call_operand.vmem [shape: f32[1,60], index: 1, kind: input, shape index: {}]   ;;  %s1531_s2 = inlined_call_operand.vmem [shape: f32[1,60], index: 2, kind: input, shape index: {}]   ;;  %s1532_s4 = inlined_call_operand.vmem [shape: f32[60,32], index: 4, kind: input, shape index: {}]   ;;  %s1533_s3 = inlined_call_operand.vmem [shape: f32[1,60], index: 3, kind: input, shape index: {}]   ;;  %s1534_s5 = inlined_call_operand.vmem [shape: f32[1,32], index: 5, kind: input, shape index: {}]   ;;  %s1535_s6 = inlined_call_operand.vmem [shape: f32[32,32], index: 6, kind: input, shape index: {}]   ;;  %s1536_s7 = inlined_call_operand.vmem [shape: f32[1,32], index: 7, kind: input, shape index: {}]   ;;  %s1537_s8 = inlined_call_operand.vmem [shape: f32[32,32], index: 8, kind: input, shape index: {}]   ;;  %s1538_s9 = inlined_call_operand.vmem [shape: f32[1,32], index: 9, kind: input, shape index: {}]   ;;  %s1539_s10 = inlined_call_operand.vmem [shape: f32[32,2], index: 10, kind: input, shape index: {}]   ;;  %s1540_s11 = inlined_call_operand.vmem [shape: f32[1,2], index: 11, kind: input, shape index: {}]   ;;  %s1541_s12 = inlined_call_operand.vmem [shape: f32[8,2], index: 12, kind: output, shape index: {}]  }
   0x1   :  { %v41_v0 = vld [vmem:[%s1529_s0] sm:$0xff]  ;;  %s1179_s25 = smov 20   ;;  %s1180_s26 = smov 8   ;;  %vm93_vm4 = vcmask 162816   ;;  %vm95_vm5 = vcmask 195584   ;;  %vm97_vm6 = vcmask 228352  }
   0x2   :  { %43 = vrot.lane.b32.xlu0 %v41_v0, %s1177_s23  ;;  %49 = vrot.lane.b32.xlu1 %v41_v0, %s1178_s24  ;;  %s1181_s27 = smov 16   ;;  %s1182_s28 = smov 24   ;;  %vm99_vm7 = vcmask 261120   ;;  %vm101_vm8 = vcmask 293888   ;;  %vm103_vm9 = vcmask 326656   ;;  %vm105_vm10 = vcmask 359424  }
   0x3   :  { %55 = vrot.lane.b32.xlu2 %v41_v0, %s1179_s25  ;;  %s1183_s29 = smov 28   ;;  %s1184_s30 = smov 32   ;;  %vm107_vm11 = vcmask 392192   ;;  %vm109_vm12 = vcmask 424960   ;;  %vm111_vm13 = vcmask 457728  }
   0x4   :  { %s1185_s13 = smov 36   ;;  %s1186_s14 = smov 40   ;;  %v1170_v24 = vld [vmem:[%s1530_s1] ss:$0 sm:$0xff]  ;;  %v1191_v44 = vmov 683565275  }
   0x5   :  { %s1187_s0 = smov 44   ;;  %s1188_s15 = smov 48   ;;  %v1171_v29 = vld [vmem:[%s1531_s2] ss:$0 sm:$0xff]  ;;  %v1192_v46 = vmov 2475754826  }
   0x6   :  { %s1189_s16 = smov 52   ;;  %s1190_s17 = smov 56   ;;  %v1193_v49 = vmov 2131351028   ;;  %v1194_v52 = vmov 2102212464  }
   0x7   :  { %v1195_v55 = vmov 920167782   ;;  %v1196_v58 = vmov 1326507024  }
   0xa   :  { %46 = vrot.lane.b32.xlu0 %v41_v0, %s1180_s26  ;;  %52 = vrot.lane.b32.xlu1 %v41_v0, %s1181_s27 }
   0xb   :  { %58 = vrot.lane.b32.xlu2 %v41_v0, %s1182_s28 }
  0x12   :  { %61 = vrot.lane.b32.xlu0 %v41_v0, %s1183_s29  ;;  %64 = vrot.lane.b32.xlu1 %v41_v0, %s1184_s30 }
  0x13   :  { %67 = vrot.lane.b32.xlu2 %v41_v0, %s1185_s13 }
  0x1a   :  { %70 = vrot.lane.b32.xlu0 %v41_v0, %s1186_s14  ;;  %73 = vrot.lane.b32.xlu1 %v41_v0, %s1187_s0 }
  0x1b   :  { %76 = vrot.lane.b32.xlu2 %v41_v0, %s1188_s15 }
  0x22   :  { %79 = vrot.lane.b32.xlu0 %v41_v0, %s1189_s16  ;;  %82 = vrot.lane.b32.xlu1 %v41_v0, %s1190_s17 }
  0x5d   :  { %v56_v1 = vpop.permute.xlu2 %55 }
  0x65   :  { %v59_v8 = vpop.permute.xlu2 %58 }
  0x6d   :  { %v68_v16 = vpop.permute.xlu2 %67 }
  0x74   :  { %v44_v2 = vpop.permute.xlu0 %43  ;;  %v50_v3 = vpop.permute.xlu1 %49 }
  0x75   :  { %v86_v4 = vsel %vm85_vm0, %v41_v0, %v44_v2  ;;  %v77_v23 = vpop.permute.xlu2 %76 }
  0x7c   :  { %v47_v5 = vpop.permute.xlu0 %46  ;;  %v53_v6 = vpop.permute.xlu1 %52 }
  0x7d   :  { %v88_v7 = vsel %vm87_vm1, %v86_v4, %v47_v5 }
  0x7e   :  { %v90_v9 = vsel %vm89_vm2, %v88_v7, %v50_v3 }
  0x7f   :  { %v92_v10 = vsel %vm91_vm3, %v90_v9, %v53_v6 }
  0x80   :  { %v94_v11 = vsel %vm93_vm4, %v92_v10, %v56_v1 }
  0x81   :  { %v96_v14 = vsel %vm95_vm5, %v94_v11, %v59_v8 }
  0x84   :  { %v62_v12 = vpop.permute.xlu0 %61  ;;  %v65_v13 = vpop.permute.xlu1 %64 }
  0x85   :  { %v98_v15 = vsel %vm97_vm6, %v96_v14, %v62_v12 }
  0x86   :  { %v100_v17 = vsel %vm99_vm7, %v98_v15, %v65_v13 }
  0x87   :  { %v102_v20 = vsel %vm101_vm8, %v100_v17, %v68_v16 }
  0x8c   :  { %v71_v18 = vpop.permute.xlu0 %70  ;;  %v74_v19 = vpop.permute.xlu1 %73 }
  0x8d   :  { %v104_v21 = vsel %vm103_vm9, %v102_v20, %v71_v18  ;;  %vm305_vm9 = vcmask 1043456  }
  0x8e   :  { %v106_v22 = vsel %vm105_vm10, %v104_v21, %v74_v19 }
  0x8f   :  { %v108_v25 = vsel %vm107_vm11, %v106_v22, %v77_v23 }
  0x94   :  { %v80_v26 = vpop.permute.xlu0 %79  ;;  %v83_v27 = vpop.permute.xlu1 %82 }
  0x95   :  { %v110_v28 = vsel %vm109_vm12, %v108_v25, %v80_v26 }
  0x96   :  { %v1273_v30 = vsel %vm111_vm13, %v110_v28, %v83_v27  ;;  %v1197_v28 = vmov 0  }
  0x97   :  { %v117_v31 = vmul.f32 %v1170_v24, %v1273_v30 }
  0x99   :  { %v1276_v32 = vadd.f32 %v1171_v29, %v117_v31 }
  0x9b   :  { %v126_v33 = vand.u32 2139095040, %v1276_v32  ;;  %v123_v36 = vand.u32 2147483647, %v1276_v32  ;;  %vm125_vm12 = vcmp.lt.s32.totalorder %v1276_v32, 0 }
  0x9d   :  { %v127_v34 = vshrl.u32 %v126_v33, 23  ;;  %v130_v38 = vand.u32 8388607, %v123_v36  ;;  %vm1451_vm13 = vcmp.le.f32.partialorder %v123_v36, 0.7853982 }
  0x9f   :  { %v1146_v35 = vadd.s32 4294967169, %v127_v34  ;;  %v131_v42 = vor.u32 8388608, %v130_v38 }
  0xa1   :  { %v133_v37 = vadd.s32 1, %v1146_v35  ;;  %v1293_v1 = vshll.u32 %v131_v42, 8 }
  0xa3   :  { %vm134_vm14 = vcmp.gt.s32.totalorder %v133_v37, 0  ;;  %v172_v10 = vand.u32 65535, %v1293_v1  ;;  %v173_v11 = vshrl.u32 %v1293_v1, 16 }
  0xa4   :  { %v135_v39 = vsel %vm134_vm14, %v133_v37, 0 }
  0xa5   :  { %v137_v40 = vand.u32 31, %v135_v39  ;;  %v1284_v43 = vshrl.u32 %v135_v39, 5 }
  0xa7   :  { %v1282_v41 = vsub.s32 32, %v137_v40  ;;  %v140_v45 = vshll.u32 %v1191_v44, %v137_v40  ;;  %v143_v47 = vshll.u32 %v1192_v46, %v137_v40  ;;  %v146_v51 = vshll.u32 %v1193_v49, %v137_v40 }
  0xa8   :  { %v149_v54 = vshll.u32 %v1194_v52, %v137_v40  ;;  %v152_v57 = vshll.u32 %v1195_v55, %v137_v40  ;;  %vm155_vm15 = vcmp.lt.s32.totalorder %v1284_v43, 1  ;;  %vm158_vm0 = vcmp.lt.s32.totalorder %v1284_v43, 4 }
  0xa9   :  { %v141_v48 = vshrl.u32 %v1192_v46, %v1282_v41  ;;  %v144_v50 = vshrl.u32 %v1193_v49, %v1282_v41  ;;  %v147_v53 = vshrl.u32 %v1194_v52, %v1282_v41  ;;  %v150_v56 = vshrl.u32 %v1195_v55, %v1282_v41 }
  0xaa   :  { %v153_v59 = vshrl.u32 %v1196_v58, %v1282_v41  ;;  %vm157_vm1 = vcmp.lt.s32.totalorder %v1284_v43, 3  ;;  %vm156_vm2 = vcmp.lt.s32.totalorder %v1284_v43, 2  ;;  %v139_v40 = vshrl.u32 %v1191_v44, %v1282_v41  ;;  %v295_v43 = vld [vmem:[%s1532_s4 + $0x30] sm:$0xff] }
  0xab   :  { %v142_v60 = vor.u32 %v141_v48, %v140_v45  ;;  %v145_v61 = vor.u32 %v144_v50, %v143_v47  ;;  %v148_v62 = vor.u32 %v147_v53, %v146_v51  ;;  %v151_v63 = vor.u32 %v150_v56, %v149_v54 }
  0xac   :  { %v154_v0 = vor.u32 %v153_v59, %v152_v57  ;;  %v296_v59 = vld [vmem:[%s1532_s4 + $0x38] sm:$0xf] }
  0xad   :  { %v163_v2 = vsel %vm155_vm15, %v142_v60, %v145_v61  ;;  %v167_v3 = vsel %vm155_vm15, %v145_v61, %v148_v62  ;;  %v164_v4 = vsel %vm158_vm0, %v151_v63, 920167782  ;;  %v160_v37 = vsel %vm158_vm0, %v148_v62, 2102212464 }
  0xae   :  { %v168_v5 = vsel %vm158_vm0, %v154_v0, 1326507024  ;;  %v165_v6 = vsel %vm157_vm1, %v148_v62, %v164_v4  ;;  %v159_v49 = vsel %vm155_vm15, %v139_v40, %v142_v60  ;;  %v161_v50 = vsel %vm157_vm1, %v145_v61, %v160_v37 }
  0xaf   :  { %v169_v7 = vsel %vm157_vm1, %v151_v63, %v168_v5  ;;  %v166_v8 = vsel %vm156_vm2, %v163_v2, %v165_v6  ;;  %v162_v41 = vsel %vm156_vm2, %v159_v49, %v161_v50  ;;  %v307_v61 = vsel %vm305_vm9, %v296_v59, 0 }
  0xb0   :  { %v170_v9 = vsel %vm156_vm2, %v167_v3, %v169_v7  ;;  %v196_v14 = vand.u32 65535, %v166_v8  ;;  %v197_v15 = vshrl.u32 %v166_v8, 16  ;;  %v216_v58 = vmul.u32 %v1293_v1, %v162_v41  ;;  %v294_v1 = vld [vmem:[%s1532_s4 + $0x28] sm:$0xff]  ;;  %v293_v8 = vld [vmem:[%s1532_s4 + $0x20] sm:$0xff] }
  0xb1   :  { %v174_v12 = vand.u32 65535, %v170_v9  ;;  %v175_v13 = vshrl.u32 %v170_v9, 16  ;;  %v1336_v63 = vand.u32 4294901760, %v307_v61  ;;  %v1344_v3 = vand.u32 4294901760, %v295_v43 }
  0xb2   :  { %v199_v18 = vmul.u32 %v197_v15, %v172_v10  ;;  %v200_v19 = vmul.u32 %v196_v14, %v173_v11  ;;  %v198_v23 = vmul.u32 %v196_v14, %v172_v10  ;;  %v201_v27 = vmul.u32 %v197_v15, %v173_v11  ;;  %v292_v14 = vld [vmem:[%s1532_s4 + $0x18] sm:$0xff] }
  0xb3   :  { %v177_v16 = vmul.u32 %v175_v13, %v172_v10  ;;  %v178_v17 = vmul.u32 %v174_v12, %v173_v11  ;;  %v176_v20 = vmul.u32 %v174_v12, %v172_v10  ;;  %v179_v22 = vmul.u32 %v175_v13, %v173_v11  ;;  %318 = vmatpush.msra.mxu0 %v1336_v63 }
  0xb4   :  { %v202_v24 = vshll.u32 %v199_v18, 16  ;;  %v204_v31 = vshll.u32 %v200_v19, 16  ;;  %v203_v47 = vshrl.u32 %v199_v18, 16  ;;  %v205_v53 = vshrl.u32 %v200_v19, 16  ;;  %450 = vmatpush.msra.mxu3 %v1336_v63 }
  0xb5   :  { %v180_v21 = vshll.u32 %v177_v16, 16  ;;  %v182_v25 = vshll.u32 %v178_v17, 16  ;;  %v181_v42 = vshrl.u32 %v177_v16, 16  ;;  %v183_v51 = vshrl.u32 %v178_v17, 16  ;;  %320 = vmatpush.msra.mxu0 %v1344_v3 }
  0xb6   :  { %vm206_vm4 = vc.u32 %v198_v23, %v202_v24  ;;  %v208_v33 = vadd.s32 %v202_v24, %v198_v23  ;;  %v1342_v2 = vsub.f32 %v307_v61, %v1336_v63  ;;  %v1355_v6 = vsub.f32 %v295_v43, %v1344_v3  ;;  %452 = vmatpush.msra.mxu3 %v1344_v3 }
  0xb7   :  { %vm184_vm3 = vc.u32 %v176_v20, %v180_v21  ;;  %v186_v26 = vadd.s32 %v180_v21, %v176_v20  ;;  %v207_v35 = vsel %vm206_vm4, 1, %v1197_v28  ;;  %v1357_v7 = vand.u32 4294901760, %v294_v1  ;;  %v291_v21 = vld [vmem:[%s1532_s4 + $0x10] sm:$0xff] }
  0xb8   :  { %v185_v29 = vsel %vm184_vm3, 1, %v1197_v28  ;;  %v209_v39 = vadd.s32 %v207_v35, %v201_v27  ;;  %vm210_vm6 = vc.u32 %v208_v33, %v204_v31  ;;  %v1326_v56 = vadd.s32 %v208_v33, %v204_v31  ;;  %413 = vmatpush.msra.mxu2 %v1342_v2 }
  0xb9   :  { %v187_v34 = vadd.s32 %v185_v29, %v179_v22  ;;  %vm188_vm5 = vc.u32 %v186_v26, %v182_v25  ;;  %v211_v46 = vsel %vm210_vm6, 1, %v1197_v28  ;;  %v352_v5 = vand.u32 4294901760, %v1342_v2  ;;  %322 = vmatpush.msra.mxu0 %v1357_v7  ;;  %454 = vmatpush.msra.mxu3 %v1357_v7 }
  0xba   :  { %v189_v38 = vsel %vm188_vm5, 1, %v1197_v28  ;;  %v213_v48 = vadd.s32 %v211_v46, %v209_v39  ;;  %v358_v11 = vand.u32 4294901760, %v1355_v6  ;;  %416 = vmatpush.msra.mxu2 %v1355_v6  ;;  %v1373_v12 = vsub.f32 %v294_v1, %v1357_v7  ;;  %v290_v28 = vld [vmem:[%s1532_s4 + $0x8] sm:$0xff] }
  0xbb   :  { %v191_v45 = vadd.s32 %v189_v38, %v187_v34  ;;  %v353_v10 = vsub.f32 %v1342_v2, %v352_v5  ;;  %v1375_v13 = vand.u32 4294901760, %v293_v8  ;;  %v1390_v20 = vand.u32 4294901760, %v292_v14  ;;  %v289_v38 = vld [vmem:[%s1532_s4] sm:$0xff] }
  0xbc   :  { %v214_v54 = vadd.s32 %v213_v48, %v203_v47  ;;  %v359_v17 = vsub.f32 %v1355_v6, %v358_v11  ;;  %v364_v18 = vand.u32 4294901760, %v1373_v12  ;;  %419 = vmatpush.msra.mxu2 %v1373_v12  ;;  %v1407_v27 = vand.u32 4294901760, %v291_v21 }
  0xbd   :  { %v192_v52 = vadd.s32 %v191_v45, %v181_v42  ;;  %v354_v16 = vand.u32 4294901760, %v353_v10  ;;  %v1388_v19 = vsub.f32 %v293_v8, %v1375_v13  ;;  %324 = vmatpush.msra.mxu0 %v1375_v13  ;;  %456 = vmatpush.msra.mxu3 %v1375_v13  ;;  %v1405_v26 = vsub.f32 %v292_v14, %v1390_v20 }
  0xbe   :  { %v215_v44 = vadd.s32 %v214_v54, %v205_v53  ;;  %v360_v23 = vand.u32 4294901760, %v359_v17  ;;  %v365_v24 = vsub.f32 %v1373_v12, %v364_v18  ;;  %v1415_v31 = vand.u32 4294901760, %v290_v28 }
  0xbf   :  { %v1324_v55 = vadd.s32 %v192_v52, %v183_v51  ;;  %355 = vmatpush.msra.mxu1 %v354_v16  ;;  %v370_v25 = vand.u32 4294901760, %v1388_v19  ;;  %422 = vmatpush.msra.mxu2 %v1388_v19  ;;  %v376_v37 = vand.u32 4294901760, %v1405_v26  ;;  %v381_v39 = vsub.f32 %v291_v21, %v1407_v27 }
  0xc0   :  { %v219_v57 = vadd.s32 1, %v215_v44  ;;  %326 = vmatpush.msra.mxu0 %v1390_v20  ;;  %458 = vmatpush.msra.mxu3 %v1390_v20  ;;  %v366_v34 = vand.u32 4294901760, %v365_v24  ;;  %v387_v46 = vsub.f32 %v290_v28, %v1415_v31  ;;  %v1430_v48 = vand.u32 4294901760, %v289_v38 }
  0xc1   :  { %vm218_vm8 = vc.u32 %v1324_v55, %v1326_v56  ;;  %361 = vmatpush.msra.mxu1 %v360_v23  ;;  %v371_v35 = vsub.f32 %v1388_v19, %v370_v25  ;;  %425 = vmatpush.msra.mxu2 %v1405_v26  ;;  %v377_v45 = vsub.f32 %v1405_v26, %v376_v37  ;;  %v382_v47 = vand.u32 4294901760, %v381_v39 }
  0xc2   :  { %v220_v60 = vsel %vm218_vm8, %v219_v57, %v215_v44  ;;  %328 = vmatpush.msra.mxu0 %v1407_v27  ;;  %460 = vmatpush.msra.mxu3 %v1407_v27  ;;  %v388_v50 = vand.u32 4294901760, %v387_v46  ;;  %v393_v53 = vsub.f32 %v289_v38, %v1430_v48  ;;  %v217_v54 = vadd.s32 %v1326_v56, %v1324_v55 }
  0xc3   :  { %v221_v62 = vadd.s32 %v220_v60, %v216_v58  ;;  %367 = vmatpush.msra.mxu1 %v366_v34  ;;  %v372_v42 = vand.u32 4294901760, %v371_v35  ;;  %428 = vmatpush.msra.mxu2 %v381_v39  ;;  %v378_v49 = vand.u32 4294901760, %v377_v45  ;;  %v383_v52 = vsub.f32 %v381_v39, %v382_v47 }
  0xc4   :  { %330 = vmatpush.msra.mxu0 %v1415_v31  ;;  %462 = vmatpush.msra.mxu3 %v1415_v31  ;;  %v389_v57 = vsub.f32 %v387_v46, %v388_v50  ;;  %v394_v59 = vand.u32 4294901760, %v393_v53  ;;  %vm266_vm1 = vweird.f32 %v1276_v32  ;;  %vm301_vm2 = vcmask 490496  }
  0xc5   :  { %v222_v0 = vadd.s32 536870912, %v221_v62  ;;  %373 = vmatpush.msra.mxu1 %v372_v42  ;;  %431 = vmatpush.msra.mxu2 %v387_v46  ;;  %v384_v58 = vand.u32 4294901760, %v383_v52  ;;  %v550_v52 = vld [vmem:[%s1535_s6 + $0x10] sm:$0xff] }
  0xc6   :  { %332 = vmatpush.msra.mxu0 %v1430_v48  ;;  %464 = vmatpush.msra.mxu3 %v1430_v48  ;;  %v390_v43 = vand.u32 4294901760, %v389_v57  ;;  %v395_v55 = vsub.f32 %v393_v53, %v394_v59 }
  0xc7   :  { %v1351_v4 = vshrl.u32 %v222_v0, 30  ;;  %379 = vmatpush.msra.mxu1 %v378_v49  ;;  %434 = vmatpush.msra.mxu2 %v393_v53 }
  0xc8   :  { %483 = vmatpush.msrb.mxu0 %v352_v5  ;;  %v396_v2 = vand.u32 4294901760, %v395_v55 }
  0xc9   :  { %v224_v9 = vshll.u32 %v1351_v4, 30  ;;  %385 = vmatpush.msra.mxu1 %v384_v58 }
  0xca   :  { %487 = vmatpush.msrb.mxu0 %v358_v11 }
  0xcb   :  { %v1381_v15 = vsub.s32 %v221_v62, %v224_v9  ;;  %391 = vmatpush.msra.mxu1 %v390_v43 }
  0xcc   :  { %491 = vmatpush.msrb.mxu0 %v364_v18 }
  0xcd   :  { %vm226_vm10 = vcmp.lt.s32.totalorder %v1381_v15, 0  ;;  %v227_v22 = vsub.s32 0, %v1381_v15  ;;  %397 = vmatpush.msra.mxu1 %v396_v2 }
  0xce   :  { %495 = vmatpush.msrb.mxu0 %v370_v25 }
  0xcf   :  { %v228_v29 = vsel %vm226_vm10, %v227_v22, %v1381_v15  ;;  %526 = vmatpush.msrb.mxu1 %v1336_v63  ;;  %v247_v63 = vsub.s32 4, %v1351_v4  ;;  %v278_v22 = vld [vmem:[%s1533_s3] sm:$0x1] }
  0xd0   :  { %v229_v33 = vclz %v228_v29  ;;  %499 = vmatpush.msrb.mxu0 %v376_v37  ;;  %v283_v26 = vsub.f32 1.0, %v278_v22 }
  0xd1   :  { %528 = vmatpush.msrb.mxu1 %v1344_v3  ;;  %v248_v36 = vsel %vm125_vm12, %v247_v63, %v1351_v4 }
  0xd2   :  { %v1147_v40 = vadd.s32 4294967294, %v229_v33  ;;  %503 = vmatpush.msrb.mxu0 %v382_v47  ;;  %v1172_v33 = vld [vmem:[%s1533_s3] ss:$0 sm:$0xff]  ;;  %v285_v34 = vperm.slane %v283_v26, 0 }
  0xd3   :  { %530 = vmatpush.msrb.mxu1 %v1357_v7 }
  0xd4   :  { %vm1148_vm11 = vcmp.lt.s32.totalorder %v1147_v40, 0  ;;  %507 = vmatpush.msrb.mxu0 %v388_v50 }
  0xd5   :  { %v232_v51 = vsel %vm1148_vm11, 0, %v1147_v40  ;;  %532 = vmatpush.msrb.mxu1 %v1375_v13  ;;  %v250_v13 = vsel %vm1451_vm13, 0, %v248_v36  ;;  %v282_v40 = vmul.f32 %v1172_v33, %v1273_v30 }
  0xd6   :  { %v233_v41 = vsub.s32 32, %v232_v51  ;;  %v237_v44 = vsub.s32 4294967266, %v232_v51  ;;  %v234_v60 = vshll.u32 %v1381_v15, %v232_v51  ;;  %511 = vmatpush.msrb.mxu0 %v394_v59  ;;  %v548_v59 = vld [vmem:[%s1535_s6] sm:$0xff] }
  0xd7   :  { %534 = vmatpush.msrb.mxu1 %v1390_v20  ;;  %v267_v20 = vadd.s32 3, %v250_v13  ;;  %v577_v43 = vand.u32 4294901760, %v548_v59 }
  0xd8   :  { %v235_v61 = vshrl.u32 %v217_v54, %v233_v41  ;;  %v238_v62 = vadd.s32 127, %v237_v44  ;;  %v573_v54 = vand.u32 4294901760, %v550_v52  ;;  %v549_v41 = vld [vmem:[%s1535_s6 + $0x8] sm:$0xff] }
  0xd9   :  { %536 = vmatpush.msrb.mxu1 %v1407_v27  ;;  %v268_v27 = vand.u32 3, %v267_v20  ;;  %v575_v58 = vand.u32 4294901760, %v549_v41  ;;  %v619_v2 = vsub.f32 %v548_v59, %v577_v43 }
  0xda   :  { %v236_v56 = vor.u32 %v235_v61, %v234_v60  ;;  %v239_v0 = vshll.u32 %v238_v62, 23  ;;  %v607_v57 = vsub.f32 %v550_v52, %v573_v54 }
  0xdb   :  { %538 = vmatpush.msrb.mxu1 %v1415_v31  ;;  %vm270_vm14 = vcmp.eq.s32.totalorder %v268_v27, 0  ;;  %vm273_vm15 = vcmp.eq.s32.totalorder %v268_v27, 2  ;;  %vm269_vm0 = vcmp.lt.s32.totalorder %v268_v27, 2  ;;  %v613_v62 = vsub.f32 %v549_v41, %v575_v58  ;;  %v749_v27 = vld [vmem:[%s1537_s8 + $0x18] sm:$0xff]  ;;  %v1174_v41 = vld [vmem:[%s1536_s7] ss:$0 sm:$0xff] }
  0xdc   :  { %v240_v1 = vor.u32 4788187, %v239_v0  ;;  %v243_v8 = vcvt.s32.f32 %v236_v56  ;;  %v608_v61 = vand.u32 4294901760, %v607_v57 }
  0xdd   :  { %540 = vmatpush.msrb.mxu1 %v1430_v48  ;;  %v614_v0 = vand.u32 4294901760, %v613_v62 }
  0xde   :  { %v241_v5 = vand.u32 2147483647, %v240_v1  ;;  %v609_v56 = vsub.f32 %v607_v57, %v608_v61 }
  0xe0   :  { %v244_v9 = vmul.f32 %v243_v8, %v241_v5  ;;  %v610_v1 = vand.u32 4294901760, %v609_v56  ;;  %v615_v5 = vsub.f32 %v613_v62, %v614_v0  ;;  %v620_v8 = vand.u32 4294901760, %v619_v2 }
  0xe2   :  { %v245_v6 = vxor.u32 2147483648, %v244_v9 }
  0xe4   :  { %v246_v11 = vsel %vm125_vm12, %v245_v6, %v244_v9  ;;  %v616_v9 = vand.u32 4294901760, %v615_v5  ;;  %v621_v6 = vsub.f32 %v619_v2, %v620_v8 }
  0xe5   :  { %v249_v3 = vsel %vm1451_vm13, %v1276_v32, %v246_v11  ;;  %v551_v32 = vld [vmem:[%s1535_s6 + $0x18] sm:$0xff]  ;;  %v1173_v11 = vld [vmem:[%s1534_s5] ss:$0 sm:$0xff] }
  0xe6   :  { %v251_v7 = vmul.f32 %v249_v3, %v249_v3  ;;  %v571_v30 = vand.u32 4294901760, %v551_v32  ;;  %v622_v10 = vand.u32 4294901760, %v621_v6 }
  0xe8   :  { %v252_v12 = vmul.f32 -0.001358992, %v251_v7  ;;  %v259_v14 = vmul.f32 -0.00019511016, %v251_v7  ;;  %v601_v53 = vsub.f32 %v551_v32, %v571_v30  ;;  %572 = vmatpush.msrb.mxu2 %v571_v30 }
  0xea   :  { %v253_v15 = vadd.f32 0.041655596, %v252_v12  ;;  %v260_v16 = vadd.f32 0.008332121, %v259_v14  ;;  %v602_v44 = vand.u32 4294901760, %v601_v53  ;;  %574 = vmatpush.msrb.mxu2 %v573_v54 }
  0xec   :  { %v254_v17 = vmul.f32 %v253_v15, %v251_v7  ;;  %v261_v18 = vmul.f32 %v260_v16, %v251_v7  ;;  %v603_v60 = vsub.f32 %v601_v53, %v602_v44  ;;  %576 = vmatpush.msrb.mxu2 %v575_v58 }
  0xee   :  { %v255_v19 = vadd.f32 -0.4999988, %v254_v17  ;;  %v262_v21 = vadd.f32 -0.16666654, %v261_v18  ;;  %v604_v55 = vand.u32 4294901760, %v603_v60  ;;  %578 = vmatpush.msrb.mxu2 %v577_v43 }
  0xf0   :  { %v256_v23 = vmul.f32 %v255_v19, %v251_v7  ;;  %v263_v4 = vmul.f32 %v262_v21, %v251_v7  ;;  %605 = vmatpush.msrb.mxu3 %v604_v55 }
  0xf2   :  { %v257_v24 = vadd.f32 1.0, %v256_v23  ;;  %v264_v25 = vadd.f32 1.0, %v263_v4  ;;  %611 = vmatpush.msrb.mxu3 %v610_v1 }
  0xf4   :  { %v265_v28 = vmul.f32 %v264_v25, %v249_v3  ;;  %v274_v29 = vxor.u32 2147483648, %v257_v24  ;;  %617 = vmatpush.msrb.mxu3 %v616_v9 }
  0xf6   :  { %v271_v31 = vxor.u32 2147483648, %v265_v28  ;;  %v275_v37 = vsel %vm273_vm15, %v274_v29, %v265_v28  ;;  %623 = vmatpush.msrb.mxu3 %v622_v10  ;;  %v769_v28 = vand.u32 4294901760, %v749_v27  ;;  %v748_v29 = vld [vmem:[%s1537_s8 + $0x10] sm:$0xff] }
  0xf7   :  { %v771_v33 = vand.u32 4294901760, %v748_v29 }
  0xf8   :  { %v272_v35 = vsel %vm270_vm14, %v257_v24, %v271_v31  ;;  %v799_v31 = vsub.f32 %v749_v27, %v769_v28 }
  0xf9   :  { %v276_v38 = vsel %vm269_vm0, %v272_v35, %v275_v37  ;;  %v805_v37 = vsub.f32 %v748_v29, %v771_v33 }
  0xfa   :  { %v277_v39 = vsel %vm266_vm1, nan, %v276_v38  ;;  %v800_v35 = vand.u32 4294901760, %v799_v31 }
  0xfb   :  { %v287_v42 = vmul.f32 %v285_v34, %v277_v39  ;;  %v747_v34 = vld [vmem:[%s1537_s8 + $0x8] sm:$0xff]  ;;  %v746_v39 = vld [vmem:[%s1537_s8] sm:$0xff] }
  0xfc   :  { %v773_v38 = vand.u32 4294901760, %v747_v34 }
  0xfd   :  { %v288_v45 = vadd.f32 %v287_v42, %v282_v40  ;;  %v801_v40 = vsub.f32 %v799_v31, %v800_v35  ;;  %v806_v42 = vand.u32 4294901760, %v805_v37 }
  0xff   :  { %v303_v46 = vsel %vm301_vm2, %v288_v45, 0  ;;  %v811_v45 = vsub.f32 %v747_v34, %v773_v38  ;;  %v1175_v34 = vld [vmem:[%s1538_s9] ss:$0 sm:$0xff] }
 0x100   :  { %v333_v47 = vand.u32 4294901760, %v303_v46 }
 0x102   :  { %399 = vmatmul.f32.vlgmr.msra.gmra.mxu1 %v333_v47  ;;  %v334_v48 = vsub.f32 %v303_v46, %v333_v47  ;;  %v775_v46 = vand.u32 4294901760, %v746_v39 }
 0x103   :  { %732 = vmatpush.msra.mxu1 %v571_v30 }
 0x104   :  { %437 = vmatmul.f32.vlgmr.msra.gmra.mxu2 %v334_v48  ;;  %v335_v49 = vand.u32 4294901760, %v334_v48 }
 0x105   :  { %734 = vmatpush.msra.mxu1 %v573_v54  ;;  %643 = vmatpush.msra.mxu2 %v601_v53 }
 0x106   :  { %468 = vmatmul.f32.vlgmr.msra.gmra.mxu3 %v335_v49  ;;  %v336_v50 = vsub.f32 %v334_v48, %v335_v49  ;;  %v807_v48 = vsub.f32 %v805_v37, %v806_v42  ;;  %v812_v49 = vand.u32 4294901760, %v811_v45 }
 0x107   :  { %736 = vmatpush.msra.mxu1 %v575_v58  ;;  %646 = vmatpush.msra.mxu2 %v607_v57 }
 0x108   :  { %v337_v51 = vand.u32 4294901760, %v336_v50  ;;  %672 = vmatpush.msra.mxu3 %v571_v30  ;;  %v817_v50 = vsub.f32 %v746_v39, %v775_v46  ;;  %v813_v32 = vsub.f32 %v811_v45, %v812_v49 }
 0x109   :  { %738 = vmatpush.msra.mxu1 %v577_v43  ;;  %649 = vmatpush.msra.mxu2 %v613_v62 }
 0x10a   :  { %338 = vmatmul.f32.vlgmr.msra.gmra.mxu0 %v337_v51  ;;  %542 = vmatmul.f32.vlgmr.msrb.gmra.mxu1 %v333_v47  ;;  %v808_v51 = vand.u32 4294901760, %v807_v48  ;;  %v818_v30 = vand.u32 4294901760, %v817_v50  ;;  %v814_v52 = vand.u32 4294901760, %v813_v32 }
 0x10b   :  { %701 = vmatpush.msra.mxu0 %v602_v44  ;;  %652 = vmatpush.msra.mxu2 %v619_v2 }
 0x10c   :  { %674 = vmatpush.msra.mxu3 %v573_v54  ;;  %870 = vmatpush.msrb.mxu1 %v769_v28  ;;  %v819_v53 = vsub.f32 %v817_v50, %v818_v30 }
 0x10d   :  { %705 = vmatpush.msra.mxu0 %v608_v61 }
 0x10e   :  { %676 = vmatpush.msra.mxu3 %v575_v58  ;;  %872 = vmatpush.msrb.mxu1 %v771_v33  ;;  %v820_v54 = vand.u32 4294901760, %v819_v53 }
 0x10f   :  { %709 = vmatpush.msra.mxu0 %v614_v0 }
 0x110   :  { %678 = vmatpush.msra.mxu3 %v577_v43  ;;  %874 = vmatpush.msrb.mxu1 %v773_v38 }
 0x111   :  { %713 = vmatpush.msra.mxu0 %v620_v8 }
 0x112   :  { %513 = vmatmul.f32.vlgmr.msrb.gmra.mxu0 %v333_v47  ;;  %v802_v47 = vand.u32 4294901760, %v801_v40  ;;  %876 = vmatpush.msrb.mxu1 %v775_v46 }
 0x113   :  { %841 = vmatpush.msrb.mxu0 %v799_v31 }
 0x115   :  { %844 = vmatpush.msrb.mxu0 %v805_v37 }
 0x117   :  { %847 = vmatpush.msrb.mxu0 %v811_v45 }
 0x119   :  { %850 = vmatpush.msrb.mxu0 %v817_v50 }
 0x17f   :  { %v400_v63 = vpop.f32.mrf.mxu1 }
 0x187   :  { %v339_v3 = vpop.f32.mrf.mxu0  ;;  %v438_v14 = vpop.f32.mrf.mxu2 }
 0x188   :  { %v340_v7 = vadd.f32 %v1173_v11, %v339_v3  ;;  %v543_v18 = vpop.f32.mrf.mxu1  ;;  %v947_v3 = vld [vmem:[%s1539_s10 + $0x18] sm:$0xff] }
 0x189   :  { %v469_v15 = vpop.f32.mrf.mxu3 }
 0x18a   :  { %v401_v12 = vadd.f32 %v400_v63, %v340_v7  ;;  %v967_v7 = vand.u32 4294901760, %v947_v3 }
 0x18c   :  { %v439_v36 = vadd.f32 %v438_v14, %v401_v12  ;;  %v946_v12 = vld [vmem:[%s1539_s10 + $0x10] sm:$0xff]  ;;  %v997_v14 = vsub.f32 %v947_v3, %v967_v7 }
 0x18e   :  { %v470_v16 = vadd.f32 %v469_v15, %v439_v36  ;;  %v969_v36 = vand.u32 4294901760, %v946_v12  ;;  %v945_v15 = vld [vmem:[%s1539_s10 + $0x8] sm:$0xff] }
 0x18f   :  { %v514_v13 = vpop.f32.mrf.mxu0 }
 0x190   :  { %v515_v17 = vadd.f32 %v514_v13, %v470_v16  ;;  %v998_v16 = vand.u32 4294901760, %v997_v14  ;;  %v1003_v13 = vsub.f32 %v946_v12, %v969_v36 }
 0x192   :  { %v544_v19 = vadd.f32 %v543_v18, %v515_v17  ;;  %v971_v17 = vand.u32 4294901760, %v945_v15  ;;  %v944_v18 = vld [vmem:[%s1539_s10] sm:$0xff] }
 0x194   :  { %v546_v21 = vmul.f32 0.2, %v544_v19 }
 0x196   :  { %v547_v20 = vmax.f32 %v544_v19, %v546_v21  ;;  %v999_v19 = vsub.f32 %v997_v14, %v998_v16  ;;  %v1004_v21 = vand.u32 4294901760, %v1003_v13 }
 0x198   :  { %v557_v22 = vsel %vm99_vm7, %v547_v20, 0  ;;  %v1009_v20 = vsub.f32 %v945_v15, %v971_v17 }
 0x199   :  { %v579_v23 = vand.u32 4294901760, %v557_v22 }
 0x19b   :  { %v580_v4 = vsub.f32 %v557_v22, %v579_v23  ;;  %625 = vmatmul.f32.vlgmr.msrb.gmra.mxu3 %v579_v23  ;;  %715 = vmatmul.f32.vlgmr.msra.gmra.mxu0 %v579_v23  ;;  %v973_v22 = vand.u32 4294901760, %v944_v18 }
 0x19c   :  { %740 = vmatmul.f32.vlgmr.msra.gmra.mxu1 %v579_v23  ;;  %803 = vmatpush.msrb.mxu3 %v802_v47  ;;  %v1000_v23 = vand.u32 4294901760, %v999_v19 }
 0x19d   :  { %v581_v24 = vand.u32 4294901760, %v580_v4  ;;  %968 = vmatpush.msra.mxu0 %v967_v7 }
 0x19e   :  { %809 = vmatpush.msrb.mxu3 %v808_v51  ;;  %1001 = vmatpush.msra.mxu1 %v1000_v23 }
 0x19f   :  { %v582_v25 = vsub.f32 %v580_v4, %v581_v24  ;;  %970 = vmatpush.msra.mxu0 %v969_v36 }
 0x1a0   :  { %815 = vmatpush.msrb.mxu3 %v814_v52 }
 0x1a1   :  { %v583_v26 = vand.u32 4294901760, %v582_v25  ;;  %972 = vmatpush.msra.mxu0 %v971_v17  ;;  %v1015_v25 = vsub.f32 %v944_v18, %v973_v22 }
 0x1a2   :  { %821 = vmatpush.msrb.mxu3 %v820_v54 }
 0x1a3   :  { %584 = vmatmul.f32.vlgmr.msrb.gmra.mxu2 %v583_v26  ;;  %682 = vmatmul.f32.vlgmr.msra.gmra.mxu3 %v581_v24  ;;  %v1010_v24 = vand.u32 4294901760, %v1009_v20 }
 0x1a4   :  { %770 = vmatpush.msrb.mxu2 %v769_v28  ;;  %930 = vmatpush.msra.mxu3 %v769_v28  ;;  %v1016_v28 = vand.u32 4294901760, %v1015_v25 }
 0x1a5   :  { %974 = vmatpush.msra.mxu0 %v973_v22  ;;  %v1011_v27 = vsub.f32 %v1009_v20, %v1010_v24 }
 0x1a6   :  { %772 = vmatpush.msrb.mxu2 %v771_v33  ;;  %932 = vmatpush.msra.mxu3 %v771_v33  ;;  %v1017_v31 = vsub.f32 %v1015_v25, %v1016_v28 }
 0x1a7   :  { %v1012_v29 = vand.u32 4294901760, %v1011_v27 }
 0x1a8   :  { %774 = vmatpush.msrb.mxu2 %v773_v38  ;;  %934 = vmatpush.msra.mxu3 %v773_v38  ;;  %v1018_v33 = vand.u32 4294901760, %v1017_v31 }
 0x1aa   :  { %776 = vmatpush.msrb.mxu2 %v775_v46  ;;  %936 = vmatpush.msra.mxu3 %v775_v46 }
 0x1ab   :  { %655 = vmatmul.f32.vlgmr.msra.gmra.mxu2 %v580_v4  ;;  %v1005_v4 = vsub.f32 %v1003_v13, %v1004_v21 }
 0x1ac   :  { %899 = vmatpush.msra.mxu2 %v800_v35 }
 0x1ad   :  { %v1006_v26 = vand.u32 4294901760, %v1005_v4 }
 0x1ae   :  { %903 = vmatpush.msra.mxu2 %v806_v42 }
 0x1af   :  { %1007 = vmatpush.msra.mxu1 %v1006_v26 }
 0x1b0   :  { %907 = vmatpush.msra.mxu2 %v812_v49 }
 0x1b1   :  { %1013 = vmatpush.msra.mxu1 %v1012_v29 }
 0x1b2   :  { %911 = vmatpush.msra.mxu2 %v818_v30 }
 0x1b3   :  { %1019 = vmatpush.msra.mxu1 %v1018_v33 }
 0x218   :  { %v716_v55 = vpop.f32.mrf.mxu0 }
 0x219   :  { %v741_v0 = vpop.f32.mrf.mxu1 }
 0x21e   :  { %v626_v44 = vpop.f32.mrf.mxu3 }
 0x226   :  { %v585_v57 = vpop.f32.mrf.mxu2  ;;  %v683_v62 = vpop.f32.mrf.mxu3 }
 0x227   :  { %v586_v58 = vadd.f32 %v1174_v41, %v585_v57  ;;  %v1176_v57 = vld [vmem:[%s1540_s11] ss:$0 sm:$0xff] }
 0x229   :  { %v627_v59 = vadd.f32 %v626_v44, %v586_v58 }
 0x22e   :  { %v656_v60 = vpop.f32.mrf.mxu2 }
 0x22f   :  { %v657_v61 = vadd.f32 %v656_v60, %v627_v59 }
 0x231   :  { %v684_v43 = vadd.f32 %v683_v62, %v657_v61 }
 0x233   :  { %v717_v56 = vadd.f32 %v716_v55, %v684_v43 }
 0x235   :  { %v742_v2 = vadd.f32 %v741_v0, %v717_v56 }
 0x237   :  { %v744_v1 = vmul.f32 0.2, %v742_v2 }
 0x239   :  { %v745_v5 = vmax.f32 %v742_v2, %v744_v1 }
 0x23b   :  { %v755_v8 = vsel %vm99_vm7, %v745_v5, 0 }
 0x23c   :  { %v777_v9 = vand.u32 4294901760, %v755_v8 }
 0x23e   :  { %823 = vmatmul.f32.vlgmr.msrb.gmra.mxu3 %v777_v9  ;;  %v778_v6 = vsub.f32 %v755_v8, %v777_v9 }
 0x23f   :  { %1068 = vmatpush.msrb.mxu3 %v967_v7 }
 0x240   :  { %853 = vmatmul.f32.vlgmr.msrb.gmra.mxu0 %v778_v6  ;;  %v779_v10 = vand.u32 4294901760, %v778_v6 }
 0x241   :  { %1070 = vmatpush.msrb.mxu3 %v969_v36  ;;  %1097 = vmatpush.msrb.mxu0 %v998_v16 }
 0x242   :  { %880 = vmatmul.f32.vlgmr.msrb.gmra.mxu1 %v779_v10  ;;  %v780_v11 = vsub.f32 %v778_v6, %v779_v10 }
 0x243   :  { %1072 = vmatpush.msrb.mxu3 %v971_v17  ;;  %1101 = vmatpush.msrb.mxu0 %v1004_v21 }
 0x244   :  { %v781_v63 = vand.u32 4294901760, %v780_v11  ;;  %1128 = vmatpush.msrb.mxu1 %v967_v7 }
 0x245   :  { %1074 = vmatpush.msrb.mxu3 %v973_v22  ;;  %1105 = vmatpush.msrb.mxu0 %v1010_v24 }
 0x246   :  { %782 = vmatmul.f32.vlgmr.msrb.gmra.mxu2 %v781_v63  ;;  %938 = vmatmul.f32.vlgmr.msra.gmra.mxu3 %v777_v9 }
 0x247   :  { %1039 = vmatpush.msrb.mxu2 %v997_v14  ;;  %1109 = vmatpush.msrb.mxu0 %v1016_v28 }
 0x248   :  { %1130 = vmatpush.msrb.mxu1 %v969_v36 }
 0x249   :  { %1042 = vmatpush.msrb.mxu2 %v1003_v13 }
 0x24a   :  { %1132 = vmatpush.msrb.mxu1 %v971_v17 }
 0x24b   :  { %1045 = vmatpush.msrb.mxu2 %v1009_v20 }
 0x24c   :  { %1134 = vmatpush.msrb.mxu1 %v973_v22 }
 0x24d   :  { %1048 = vmatpush.msrb.mxu2 %v1015_v25 }
 0x24e   :  { %913 = vmatmul.f32.vlgmr.msra.gmra.mxu2 %v777_v9 }
 0x2bd   :  { %v854_v40 = vpop.f32.mrf.mxu0 }
 0x2bf   :  { %v881_v45 = vpop.f32.mrf.mxu1 }
 0x2c1   :  { %v824_v35 = vpop.f32.mrf.mxu3 }
 0x2c9   :  { %v783_v37 = vpop.f32.mrf.mxu2  ;;  %v939_v49 = vpop.f32.mrf.mxu3 }
 0x2ca   :  { %v784_v38 = vadd.f32 %v1175_v34, %v783_v37 }
 0x2cc   :  { %v825_v39 = vadd.f32 %v824_v35, %v784_v38 }
 0x2ce   :  { %v855_v42 = vadd.f32 %v854_v40, %v825_v39 }
 0x2d0   :  { %v882_v46 = vadd.f32 %v881_v45, %v855_v42 }
 0x2d1   :  { %v914_v47 = vpop.f32.mrf.mxu2 }
 0x2d2   :  { %v915_v48 = vadd.f32 %v914_v47, %v882_v46 }
 0x2d4   :  { %v940_v50 = vadd.f32 %v939_v49, %v915_v48 }
 0x2d6   :  { %v942_v51 = vmul.f32 0.2, %v940_v50 }
 0x2d8   :  { %v943_v32 = vmax.f32 %v940_v50, %v942_v51 }
 0x2da   :  { %v953_v30 = vsel %vm99_vm7, %v943_v32, 0  ;;  %vm1140_vm7 = vcmask 15360  }
 0x2db   :  { %v975_v52 = vand.u32 4294901760, %v953_v30 }
 0x2dd   :  { %1021 = vmatmul.f32.vlgmr.msra.gmra.mxu1 %v975_v52  ;;  %v976_v53 = vsub.f32 %v953_v30, %v975_v52 }
 0x2df   :  { %1051 = vmatmul.f32.vlgmr.msrb.gmra.mxu2 %v976_v53  ;;  %v977_v54 = vand.u32 4294901760, %v976_v53 }
 0x2e1   :  { %1078 = vmatmul.f32.vlgmr.msrb.gmra.mxu3 %v977_v54  ;;  %v978_v41 = vsub.f32 %v976_v53, %v977_v54 }
 0x2e3   :  { %v979_v44 = vand.u32 4294901760, %v978_v41 }
 0x2e5   :  { %980 = vmatmul.f32.vlgmr.msra.gmra.mxu0 %v979_v44  ;;  %1136 = vmatmul.f32.vlgmr.msrb.gmra.mxu1 %v975_v52 }
 0x2ed   :  { %1111 = vmatmul.f32.vlgmr.msrb.gmra.mxu0 %v975_v52 }
 0x35a   :  { %v1022_v58 = vpop.f32.mrf.mxu1 }
 0x362   :  { %v981_v59 = vpop.f32.mrf.mxu0  ;;  %v1052_v62 = vpop.f32.mrf.mxu2 }
 0x363   :  { %v982_v60 = vadd.f32 %v1176_v57, %v981_v59  ;;  %v1137_v1 = vpop.f32.mrf.mxu1 }
 0x364   :  { %v1079_v55 = vpop.f32.mrf.mxu3 }
 0x365   :  { %v1023_v61 = vadd.f32 %v1022_v58, %v982_v60 }
 0x367   :  { %v1053_v43 = vadd.f32 %v1052_v62, %v1023_v61 }
 0x369   :  { %v1080_v56 = vadd.f32 %v1079_v55, %v1053_v43 }
 0x36a   :  { %v1112_v0 = vpop.f32.mrf.mxu0 }
 0x36b   :  { %v1113_v2 = vadd.f32 %v1112_v0, %v1080_v56 }
 0x36d   :  { %v1138_v5 = vadd.f32 %v1137_v1, %v1113_v2 }
 0x36f   :  { %1141 = vst.msk [vmem:[%s1541_s12] sm:$0xff] %vm1140_vm7, %v1138_v5 }

</bundles_post_ra>
